<compile_context>
chip_gen: v6e
topology: v6e:2x2x1
jax: 0.10.0
libtpu: 0.0.40
codegen_flags: <defaults>
</compile_context>

<pallas_src>
import functools

import jax
import jax.numpy as jnp
from jax import lax
from jax.experimental import pallas as pl
from jax.experimental.pallas import tpu as pltpu

HIDDEN = 64
NUM_CLASSES = 2
LANES = 128


def ffn_kernel(x_ref, w1_ref, b1_ref, w2d_ref, b2d_ref, o_ref):
    # x_ref:   (tile_p, pack*D)      packed input rows, lane-dense (pack*D == 128)
    # w1_ref:  (pack*D, pack*HIDDEN) block-diagonal fc1 weight, resident
    # b1_ref:  (1, pack*HIDDEN)      tiled fc1 bias (f32), resident
    # w2d_ref: (pack, pack*HIDDEN)   fc2 logit-difference block-row (f32), resident
    # b2d_ref: (1, 1) in SMEM        fc2 logit-difference bias scalar
    # o_ref:   (pack, tile_p)        class-0 probability, packed, lane-dense
    x = x_ref[...]

    # fc1 + ReLU (MXU matmul, f32 accumulate).  Column block r of h holds the hidden
    # activations of packed sub-row r.
    h = jnp.dot(x, w1_ref[...], preferred_element_type=jnp.float32) + b1_ref[...]
    h = jnp.maximum(h, 0.0)                                   # (tile_p, pack*HIDDEN) f32

    # fc2 + 2-class softmax collapsed: softmax([a0, a1])[0] == sigmoid(a0 - a1).
    # z[r, p] = <w2_diff, h[p, r*H:(r+1)*H]>  ->  (pack, tile_p), lane-dense.
    z = lax.dot_general(
        w2d_ref[...], h,
        dimension_numbers=(((1,), (1,)), ((), ())),
        preferred_element_type=jnp.float32,
    )
    z = z + b2d_ref[0, 0]                                     # SMEM scalar add

    # sigmoid(z) = 0.5 * (tanh(z/2) + 1): one EUP transcendental, exact in f32.
    o_ref[...] = (0.5 * (jnp.tanh(0.5 * z) + 1.0)).astype(o_ref.dtype)


@functools.partial(jax.jit, static_argnames=("tile_m",))
def feedforward(x, w1, b1, w2, b2, *, tile_m=8192):
    B, S, D = x.shape
    assert w1.shape == (D, HIDDEN), f"w1 must be (input_size, {HIDDEN}), got {w1.shape}"
    assert w2.shape == (HIDDEN, NUM_CLASSES), f"w2 must be ({HIDDEN}, {NUM_CLASSES})"
    # TODO(synk): fall back to an unpacked (M, D) layout when input_size does not divide 128.
    assert LANES % D == 0, "packed layout assumes input_size divides 128"
    pack = LANES // D

    M = B * S
    x2d = x.reshape(M, D)

    # Pad only up to the packing factor (<= pack-1 rows); demo shapes never hit this.
    m_pack = ((M + pack - 1) // pack) * pack
    if m_pack != M:
        x2d = jnp.pad(x2d, ((0, m_pack - M), (0, 0)))
    mp = m_pack // pack
    x_packed = x2d.reshape(mp, pack * D)          # free row-major reshape, lane-dense

    # Packed-domain parameters (tiny, built once per call).
    w1_bd = jnp.kron(jnp.eye(pack, dtype=w1.dtype), w1)            # (pack*D, pack*HIDDEN)
    b1_t = jnp.tile(jnp.asarray(b1, jnp.float32).reshape(1, HIDDEN), (1, pack))
    w2_diff = (w2[:, 0] - w2[:, 1]).astype(jnp.float32)            # (HIDDEN,)
    w2d_bd = jnp.kron(jnp.eye(pack, dtype=jnp.float32), w2_diff[None, :])  # (pack, pack*HIDDEN)
    b2f = jnp.asarray(b2, jnp.float32).reshape(-1)
    assert b2f.shape == (NUM_CLASSES,), "b2 must hold exactly 2 class biases"
    b2_diff = (b2f[0] - b2f[1]).reshape(1, 1)                      # (1, 1) -> SMEM

    # Tile size in packed rows (multiple of 8 sublanes); clamp to the array when the
    # whole problem fits in one tile so block dims stay legal.
    tile_p = max(8, (tile_m // pack) // 8 * 8)
    if mp <= tile_p:
        tile_p = mp
    grid = (pl.cdiv(mp, tile_p),)

    out_packed = pl.pallas_call(
        ffn_kernel,
        out_shape=jax.ShapeDtypeStruct((pack, mp), jnp.float32),
        grid_spec=pltpu.PrefetchScalarGridSpec(
            num_scalar_prefetch=0,
            grid=grid,
            in_specs=[
                pl.BlockSpec((tile_p, pack * D), lambda i: (i, 0)),        # packed x rows
                pl.BlockSpec((pack * D, pack * HIDDEN), lambda i: (0, 0)), # W1 block-diag
                pl.BlockSpec((1, pack * HIDDEN), lambda i: (0, 0)),        # b1 tiled
                pl.BlockSpec((pack, pack * HIDDEN), lambda i: (0, 0)),     # fc2 diff block-row
                pl.BlockSpec(memory_space=pltpu.MemorySpace.SMEM),         # b2 diff scalar
            ],
            out_specs=pl.BlockSpec((pack, tile_p), lambda i: (0, i)),      # lane-dense output
        ),
        compiler_params=pltpu.CompilerParams(
            dimension_semantics=("parallel",),          # shard row-tiles across v7x TCs
            vmem_limit_bytes=48 * 1024 * 1024,          # headroom, still < v7x 64 MiB physical
        ),
    )(x_packed, w1_bd, b1_t, w2d_bd, b2_diff)

    # Un-interleave the packing: out_packed[r, p] is row p*pack + r.  Output is tiny
    # (4 bytes/row), so this transpose + stack is negligible layout plumbing.
    p0 = out_packed.T.reshape(m_pack)[:M]                          # (M,)
    out2d = jnp.stack([p0, 1.0 - p0], axis=-1)                     # (M, 2)
    return out2d.reshape(B, S, NUM_CLASSES)


def init_params(key, input_size):
    # PyTorch nn.Linear default init: U(-1/sqrt(fan_in), 1/sqrt(fan_in)),
    # weights stored pre-transposed as (in, out) so the hot path is row @ W.
    k1, k2, k3, k4 = jax.random.split(key, 4)
    bound1 = 1.0 / (input_size ** 0.5)
    bound2 = 1.0 / (HIDDEN ** 0.5)
    w1 = jax.random.uniform(k1, (input_size, HIDDEN), jnp.float32, -bound1, bound1)
    b1 = jax.random.uniform(k2, (1, HIDDEN), jnp.float32, -bound1, bound1)
    w2 = jax.random.uniform(k3, (HIDDEN, NUM_CLASSES), jnp.float32, -bound2, bound2)
    b2 = jax.random.uniform(k4, (1, NUM_CLASSES), jnp.float32, -bound2, bound2)
    return w1, b1, w2, b2


def reference(x, w1, b1, w2, b2):
    h = jnp.maximum(x @ w1 + b1.reshape(-1), 0.0)
    a2 = h @ w2 + b2.reshape(-1)
    return jax.nn.softmax(a2, axis=2)


if __name__ == "__main__":
    key = jax.random.PRNGKey(0)
    kx1, kx2, kx3, kp = jax.random.split(key, 4)

    INPUT_SIZE = 32
    w1, b1, w2, b2 = init_params(kp, INPUT_SIZE)

    # Case 1: small shape consistent with the module (single partial tile, grid=1).
    x_small = jax.random.normal(kx1, (2, 8, INPUT_SIZE), jnp.float32)
    out_small = jax.block_until_ready(feedforward(x_small, w1, b1, w2, b2))
    ref_small = reference(x_small, w1, b1, w2, b2)
    assert out_small.shape == (2, 8, NUM_CLASSES)
    assert jnp.allclose(out_small, ref_small, atol=5e-5, rtol=5e-5), "mismatch (small)"

    # Case 2: multi-step grid (M=2048 -> 512 packed rows; tile_m=512 -> 4 steps),
    # exercising the tiled path that megacore sharding relies on.
    x_big = jax.random.normal(kx2, (8, 256, INPUT_SIZE), jnp.float32)
    out_big = jax.block_until_ready(feedforward(x_big, w1, b1, w2, b2, tile_m=512))
    ref_big = reference(x_big, w1, b1, w2, b2)
    assert out_big.shape == (8, 256, NUM_CLASSES)
    assert jnp.allclose(out_big, ref_big, atol=5e-5, rtol=5e-5), "mismatch (big)"

    # Case 3: non-divisible row count (M=1250 -> 313 packed rows, 3 grid steps with a
    # masked partial last block) to exercise the no-jnp.pad remainder handling.
    x_rag = jax.random.normal(kx3, (5, 250, INPUT_SIZE), jnp.float32)
    out_rag = jax.block_until_ready(feedforward(x_rag, w1, b1, w2, b2, tile_m=512))
    ref_rag = reference(x_rag, w1, b1, w2, b2)
    assert out_rag.shape == (5, 250, NUM_CLASSES)
    assert jnp.allclose(out_rag, ref_rag, atol=5e-5, rtol=5e-5), "mismatch (ragged)"

    print("KERNEL_OK")
</pallas_src>

<mosaic_0001>
module attributes {stable_mosaic.version = 11 : i64} {
  func.func @ffn_kernel(%arg0: i32, %arg1: memref<4x128xf32, #tpu.memory_space<vmem>>, %arg2: memref<128x256xf32, #tpu.memory_space<vmem>>, %arg3: memref<1x256xf32, #tpu.memory_space<vmem>>, %arg4: memref<4x256xf32, #tpu.memory_space<vmem>>, %arg5: memref<1x1xf32, #tpu.memory_space<smem>>, %arg6: memref<4x4xf32, #tpu.memory_space<vmem>>) attributes {dimension_semantics = [#tpu.dimension_semantics<parallel>], iteration_bounds = array<i64: 1>, scalar_prefetch = 0 : i64, scratch_operands = 0 : i64, tpu.core_type = #tpu.core_type<tc>, window_params = [{transform_indices = @transform_0, window_bounds = array<i64: 4, 128>}, {pipeline_mode = #tpu.pipeline_mode<synchronous>, transform_indices = @transform_1, window_bounds = array<i64: 128, 256>}, {pipeline_mode = #tpu.pipeline_mode<synchronous>, transform_indices = @transform_2, window_bounds = array<i64: 1, 256>}, {pipeline_mode = #tpu.pipeline_mode<synchronous>, transform_indices = @transform_3, window_bounds = array<i64: 4, 256>}, {transform_indices = @transform_4, window_bounds = array<i64: 1, 1>}, {transform_indices = @transform_5, window_bounds = array<i64: 4, 4>}]} {
    %c0 = arith.constant 0 : index
    %c0_0 = arith.constant 0 : index
    %0 = vector.load %arg1[%c0, %c0_0] : memref<4x128xf32, #tpu.memory_space<vmem>>, vector<4x128xf32>
    %c0_1 = arith.constant 0 : index
    %c0_2 = arith.constant 0 : index
    %1 = vector.load %arg2[%c0_1, %c0_2] : memref<128x256xf32, #tpu.memory_space<vmem>>, vector<128x256xf32>
    %cst = arith.constant dense<0.000000e+00> : vector<4x256xf32>
    %2 = tpu.matmul %0, %1, %cst {dimension_numbers = #tpu.dot_dimension_numbers<[1], [0], [0], [1], [0, 0, 1, 1], [], []>} : vector<4x128xf32>, vector<128x256xf32>, vector<4x256xf32> -> vector<4x256xf32>
    %c0_3 = arith.constant 0 : index
    %c0_4 = arith.constant 0 : index
    %3 = vector.load %arg3[%c0_3, %c0_4] : memref<1x256xf32, #tpu.memory_space<vmem>>, vector<1x256xf32>
    %4 = vector.broadcast %3 : vector<1x256xf32> to vector<4x256xf32>
    %5 = arith.addf %2, %4 : vector<4x256xf32>
    %cst_5 = arith.constant 0.000000e+00 : f32
    %6 = vector.broadcast %cst_5 : f32 to vector<4x256xf32>
    %7 = arith.maximumf %5, %6 : vector<4x256xf32>
    %c0_6 = arith.constant 0 : index
    %c0_7 = arith.constant 0 : index
    %8 = vector.load %arg4[%c0_6, %c0_7] : memref<4x256xf32, #tpu.memory_space<vmem>>, vector<4x256xf32>
    %cst_8 = arith.constant dense<0.000000e+00> : vector<4x4xf32>
    %9 = tpu.matmul %8, %7, %cst_8 {dimension_numbers = #tpu.dot_dimension_numbers<[1], [1], [0], [0], [0, 0, 1, 0], [], []>} : vector<4x256xf32>, vector<4x256xf32>, vector<4x4xf32> -> vector<4x4xf32>
    %c0_9 = arith.constant 0 : index
    %c0_10 = arith.constant 0 : index
    %10 = memref.load %arg5[%c0_9, %c0_10] : memref<1x1xf32, #tpu.memory_space<smem>>
    %11 = vector.broadcast %10 : f32 to vector<4x4xf32>
    %12 = arith.addf %9, %11 : vector<4x4xf32>
    %cst_11 = arith.constant 5.000000e-01 : f32
    %13 = vector.broadcast %cst_11 : f32 to vector<4x4xf32>
    %14 = arith.mulf %13, %12 : vector<4x4xf32>
    %15 = math.tanh %14 : vector<4x4xf32>
    %cst_12 = arith.constant 1.000000e+00 : f32
    %16 = vector.broadcast %cst_12 : f32 to vector<4x4xf32>
    %17 = arith.addf %15, %16 : vector<4x4xf32>
    %cst_13 = arith.constant 5.000000e-01 : f32
    %18 = vector.broadcast %cst_13 : f32 to vector<4x4xf32>
    %19 = arith.mulf %18, %17 : vector<4x4xf32>
    %c0_14 = arith.constant 0 : index
    %c0_15 = arith.constant 0 : index
    %20 = vector.load %arg6[%c0_14, %c0_15] : memref<4x4xf32, #tpu.memory_space<vmem>>, vector<4x4xf32>
    tpu.vector_store %arg6[%c0_14, %c0_15], %19 {strides = array<i32>} : memref<4x4xf32, #tpu.memory_space<vmem>>, vector<4x4xf32>,
    return
  }
  func.func @transform_0(%arg0: i32) -> (i32, i32) {
    %c0_i32 = arith.constant 0 : i32
    %c0_i32_0 = arith.constant 0 : i32
    return %arg0, %c0_i32 : i32, i32
  }
  func.func @transform_1(%arg0: i32) -> (i32, i32) {
    %c0_i32 = arith.constant 0 : i32
    %c0_i32_0 = arith.constant 0 : i32
    %c0_i32_1 = arith.constant 0 : i32
    return %c0_i32, %c0_i32_0 : i32, i32
  }
  func.func @transform_2(%arg0: i32) -> (i32, i32) {
    %c0_i32 = arith.constant 0 : i32
    %c0_i32_0 = arith.constant 0 : i32
    %c0_i32_1 = arith.constant 0 : i32
    return %c0_i32, %c0_i32_0 : i32, i32
  }
  func.func @transform_3(%arg0: i32) -> (i32, i32) {
    %c0_i32 = arith.constant 0 : i32
    %c0_i32_0 = arith.constant 0 : i32
    %c0_i32_1 = arith.constant 0 : i32
    return %c0_i32, %c0_i32_0 : i32, i32
  }
  func.func @transform_4(%arg0: i32) -> (i32, i32) {
    %c0_i32 = arith.constant 0 : i32
    %c0_i32_0 = arith.constant 0 : i32
    %c0_i32_1 = arith.constant 0 : i32
    return %c0_i32, %c0_i32_0 : i32, i32
  }
  func.func @transform_5(%arg0: i32) -> (i32, i32) {
    %c0_i32 = arith.constant 0 : i32
    %c0_i32_0 = arith.constant 0 : i32
    return %c0_i32, %arg0 : i32, i32
  }
}

</mosaic_0001>

<bundles_post_ra>
// kernel: feedforward.1
= control target key start
LH: loop header
LB: loop body
LE: loop exit
PB: predicated region body
PF: predicated region fallthrough
CT: control target
= control target key end

     0   :  { %v229_v3 = vmov 0.0   ;;  %v56_v36 = vlaneseq  ;;  %vm219_vm0 = vcmask 27648   ;;  %s371_s1 = inlined_call_operand.vmem [shape: f32[128,256], index: 1, kind: input, shape index: {}]   ;;  %s372_s0 = inlined_call_operand.vmem [shape: f32[4,128], index: 0, kind: input, shape index: {}]   ;;  %s373_s3 = inlined_call_operand.vmem [shape: f32[4,256], index: 3, kind: input, shape index: {}]   ;;  %s374_s2 = inlined_call_operand.vmem [shape: f32[1,256], index: 2, kind: input, shape index: {}]   ;;  %s375_s4 = inlined_call_operand.<no memory space> [shape: f32[1,1], index: 4, kind: input, shape index: {}]   ;;  %s376_s5 = inlined_call_operand.vmem [shape: f32[4,4], index: 5, kind: output, shape index: {}]  }
   0x1   :  { %v53_v0 = vld [vmem:[%s371_s1 + $0xf8] sm:$0xff]  ;;  %v52_v1 = vld [vmem:[%s371_s1 + $0xf0] sm:$0xff]  ;;  %v51_v2 = vld [vmem:[%s371_s1 + $0xe8] sm:$0xff]  ;;  %130 = vmatprep.mubr.f32.mxu0 %v229_v3  ;;  %v141_v49 = vstv %s375_s4 }
   0x2   :  { %66 = vmatprep.subr.mxu0 %v53_v0  ;;  %v50_v4 = vld [vmem:[%s371_s1 + $0xe0] sm:$0xff]  ;;  %v49_v5 = vld [vmem:[%s371_s1 + $0xd8] sm:$0xff]  ;;  %v48_v6 = vld [vmem:[%s371_s1 + $0xd0] sm:$0xff]  ;;  %v57_v37 = vshrl.u32 %v56_v36, 7 }
   0x3   :  { %67 = vmatpush1.msra.mxu0 %v52_v1  ;;  %v47_v7 = vld [vmem:[%s371_s1 + $0xc8] sm:$0xff]  ;;  %v46_v8 = vld [vmem:[%s371_s1 + $0xc0] sm:$0xff]  ;;  %v45_v9 = vld [vmem:[%s371_s1 + $0xb8] sm:$0xff] }
   0x4   :  { %68 = vmatprep.subr.mxu0 %v51_v2  ;;  %v44_v10 = vld [vmem:[%s371_s1 + $0xb0] sm:$0xff]  ;;  %v43_v11 = vld [vmem:[%s371_s1 + $0xa8] sm:$0xff]  ;;  %v42_v12 = vld [vmem:[%s371_s1 + $0xa0] sm:$0xff]  ;;  %v58_v38 = vsub.s32 0, %v57_v37  ;;  %v62_v40 = vsub.s32 1, %v57_v37 }
   0x5   :  { %69 = vmatpush1.msra.mxu0 %v50_v4  ;;  %v41_v13 = vld [vmem:[%s371_s1 + $0x98] sm:$0xff]  ;;  %v40_v14 = vld [vmem:[%s371_s1 + $0x90] sm:$0xff]  ;;  %v39_v15 = vld [vmem:[%s371_s1 + $0x88] sm:$0xff] }
   0x6   :  { %70 = vmatprep.subr.mxu0 %v49_v5  ;;  %v38_v16 = vld [vmem:[%s371_s1 + $0x80] sm:$0xff]  ;;  %v37_v17 = vld [vmem:[%s371_s1 + $0x78] sm:$0xff]  ;;  %v36_v18 = vld [vmem:[%s371_s1 + $0x70] sm:$0xff] }
   0x7   :  { %71 = vmatpush1.msra.mxu0 %v48_v6  ;;  %v35_v19 = vld [vmem:[%s371_s1 + $0x68] sm:$0xff]  ;;  %v34_v20 = vld [vmem:[%s371_s1 + $0x60] sm:$0xff]  ;;  %v33_v21 = vld [vmem:[%s371_s1 + $0x58] sm:$0xff] }
   0x8   :  { %72 = vmatprep.subr.mxu0 %v47_v7  ;;  %v32_v22 = vld [vmem:[%s371_s1 + $0x50] sm:$0xff]  ;;  %v31_v23 = vld [vmem:[%s371_s1 + $0x48] sm:$0xff]  ;;  %v30_v24 = vld [vmem:[%s371_s1 + $0x40] sm:$0xff] }
   0x9   :  { %73 = vmatpush1.msra.mxu0 %v46_v8  ;;  %v29_v25 = vld [vmem:[%s371_s1 + $0x38] sm:$0xff]  ;;  %v28_v26 = vld [vmem:[%s371_s1 + $0x30] sm:$0xff]  ;;  %v27_v27 = vld [vmem:[%s371_s1 + $0x28] sm:$0xff] }
   0xa   :  { %74 = vmatprep.subr.mxu0 %v45_v9  ;;  %v26_v28 = vld [vmem:[%s371_s1 + $0x20] sm:$0xff]  ;;  %v25_v29 = vld [vmem:[%s371_s1 + $0x18] sm:$0xff]  ;;  %v24_v30 = vld [vmem:[%s371_s1 + $0x10] sm:$0xff] }
   0xb   :  { %75 = vmatpush1.msra.mxu0 %v44_v10  ;;  %v23_v31 = vld [vmem:[%s371_s1 + $0x8] sm:$0xff]  ;;  %v22_v32 = vld [vmem:[%s371_s1] sm:$0xff] }
   0xc   :  { %76 = vmatprep.subr.mxu0 %v43_v11  ;;  %v21_v33 = vld [vmem:[%s372_s0] sm:$0xf] }
   0xd   :  { %77 = vmatpush1.msra.mxu0 %v42_v12  ;;  %v139_v34 = vld [vmem:[%s373_s3] sm:$0xff] }
   0xe   :  { %78 = vmatprep.subr.mxu0 %v41_v13  ;;  %v143_v35 = vcombine.high %v139_v34, %v139_v34  ;;  %v54_v39 = vld [vmem:[%s374_s2] sm:$0x3] }
   0xf   :  { %79 = vmatpush1.msra.mxu0 %v40_v14  ;;  %v59_v41 = vrot.slane %v54_v39, %v58_v38  ;;  %v63_v42 = vrot.slane %v54_v39, %v62_v40 }
  0x10   :  { %80 = vmatprep.subr.mxu0 %v39_v15  ;;  %209 = vmatprep.mubr.f32.mxu1 %v143_v35 }
  0x11   :  { %81 = vmatpush1.msra.mxu0 %v38_v16 }
  0x12   :  { %82 = vmatprep.subr.mxu0 %v37_v17 }
  0x13   :  { %83 = vmatpush1.msra.mxu0 %v36_v18 }
  0x14   :  { %84 = vmatprep.subr.mxu0 %v35_v19 }
  0x15   :  { %85 = vmatpush1.msra.mxu0 %v34_v20 }
  0x16   :  { %86 = vmatprep.subr.mxu0 %v33_v21 }
  0x17   :  { %87 = vmatpush1.msra.mxu0 %v32_v22 }
  0x18   :  { %88 = vmatprep.subr.mxu0 %v31_v23 }
  0x19   :  { %89 = vmatpush1.msra.mxu0 %v30_v24 }
  0x1a   :  { %90 = vmatprep.subr.mxu0 %v29_v25 }
  0x1b   :  { %91 = vmatpush1.msra.mxu0 %v28_v26 }
  0x1c   :  { %92 = vmatprep.subr.mxu0 %v27_v27 }
  0x1d   :  { %93 = vmatpush1.msra.mxu0 %v26_v28 }
  0x1e   :  { %94 = vmatprep.subr.mxu0 %v25_v29 }
  0x1f   :  { %95 = vmatpush1.msra.mxu0 %v24_v30 }
  0x20   :  { %96 = vmatprep.subr.mxu0 %v23_v31 }
  0x21   :  { %97 = vmatpush1.msra.mxu0 %v22_v32 }
  0x22   :  { %131 = vmatmul.mubr.f32.vlgmr.msra.gmra.mxu0 %v21_v33 }
  0xe2   :  { %v132_v43 = vpop.f32.mrf.mxu0 }
  0xe3   :  { %v133_v44 = vadd.f32 %v132_v43, %v59_v41 }
  0xe4   :  { %v134_v45 = vpop.f32.mrf.mxu0 }
  0xe5   :  { %v135_v46 = vadd.f32 %v134_v45, %v63_v42  ;;  %v137_v48 = vmax.f32 %v133_v44, 0.0 }
  0xe7   :  { %v138_v47 = vmax.f32 %v135_v46, 0.0 }
  0xe9   :  { %175 = vmatprep.subr.mxu1 %v138_v47 }
  0xea   :  { %176 = vmatpush1.xpose.msra.mxu1 %v137_v48 }
  0xed   :  { %210 = vmatmul.mubr.f32.vlgmr.msra.gmra.mxu1 %v139_v34 }
 0x1ad   :  { %v211_v50 = vpop.f32.mrf.mxu1 }
 0x1ae   :  { %v212_v51 = vadd.f32 %v211_v50, %v141_v49 }
 0x1af   :  { %v213_v52 = vpop.f32.mrf.mxu1 }
 0x1b0   :  { %v215_v53 = vmul.f32 0.5, %v212_v51 }
 0x1b2   :  { %227 = vtanh.f32 %v215_v53 }
 0x1bf   :  { %v228_v54 = vpop.eup %227 }
 0x1c0   :  { %v217_v55 = vadd.f32 1.0, %v228_v54 }
 0x1c2   :  { %v218_v56 = vmul.f32 0.5, %v217_v55 }
 0x1c4   :  { %220 = vst.msk [vmem:[%s376_s5] sm:$0xf] %vm219_vm0, %v218_v56 }

</bundles_post_ra>
